<compile_context>
chip_gen: v7x
topology: tpu7x:2x2x1
jax: 0.10.0
libtpu: 0.0.40
codegen_flags: <defaults>
</compile_context>

<pallas_src>
import functools

import jax
import jax.numpy as jnp
from jax.experimental import pallas as pl
from jax.experimental.pallas import tpu as pltpu


def _round_up(x, m):
    return (x + m - 1) // m * m


def _lstm_fused_kernel(lens_ref, gx_ref, whh_ref, out_ref, hn_ref, cn_ref, *,
                       seq_len, hidden_pad):
    """Whole LSTM recurrence for one batch tile; time loop fused in-kernel.

    Refs (one batch tile of size Bt, padded hidden Hp):
      lens_ref: (Bt, Hp) int32   lengths broadcast across lanes (loaded once)
      gx_ref:   (T, Bt, 4*Hp) f32  precomputed x @ W_ih^T + bias, gate-aligned
      whh_ref:  (Hp, 4*Hp) bf16    recurrent weights, gate-aligned columns
      out_ref:  (T, Bt, Hp) f32    outputs (resident slab, written back once)
      hn_ref, cn_ref: (Bt, Hp) f32 final hidden / cell state
    """
    Hp = hidden_pad
    lens = lens_ref[...]            # loaded once, one vreg row-mask operand
    whh = whh_ref[...]              # resident bf16 weights

    zeros = jnp.zeros(hn_ref.shape, hn_ref.dtype)

    def step(t, carry):
        h, c = carry
        # Serial-chain matmul only: (Bt, Hp)bf16 x (Hp, 4Hp)bf16 -> f32 acc.
        gates = gx_ref[t] + jnp.dot(h.astype(jnp.bfloat16), whh,
                                    preferred_element_type=jnp.float32)
        # Gate slices are lane-aligned (Hp is a multiple of 128).
        i_g = jax.nn.sigmoid(gates[:, 0 * Hp:1 * Hp])
        f_g = jax.nn.sigmoid(gates[:, 1 * Hp:2 * Hp])
        g_g = jnp.tanh(gates[:, 2 * Hp:3 * Hp])
        o_g = jax.nn.sigmoid(gates[:, 3 * Hp:4 * Hp])

        c_new = f_g * c + i_g * g_g
        h_new = o_g * jnp.tanh(c_new)

        # Packed-sequence semantics: freeze state and emit zeros past length.
        mask = t < lens
        c_upd = jnp.where(mask, c_new, c)
        h_upd = jnp.where(mask, h_new, h)
        out_ref[t] = jnp.where(mask, h_upd, 0.0)
        return (h_upd, c_upd)

    h_n, c_n = jax.lax.fori_loop(0, seq_len, step, (zeros, zeros))
    hn_ref[...] = h_n
    cn_ref[...] = c_n


def encoder_rnn_forward(input_seqs, input_lengths, params, *, batch_tile=8):
    """Forward pass of EncoderRNN.

    Args:
      input_seqs: int32 [T, B] token ids.
      input_lengths: int32 [B] valid lengths (sorted descending, as PyTorch's
        pack_padded_sequence requires).
      params: dict with embedding / LSTM weights.
      batch_tile: batch rows per grid step (multiple of 8); grid axis is
        "parallel" so v7x can split batch tiles across its two TensorCores.

    Returns:
      outputs: float32 [T, B, H] (zero-padded past lengths)
      (h_n, c_n): each float32 [1, B, H]
    """
    assert batch_tile % 8 == 0
    T, B = input_seqs.shape
    V, H = params["embedding"].shape
    Hp = _round_up(H, 128)          # lane-aligned per-gate width
    Bp = _round_up(B, batch_tile)   # sublane-aligned batch
    Bt = batch_tile
    nb = Bp // Bt

    # --- glue: embedding lookup + (eval-mode, identity) dropout -------------
    emb = jnp.take(params["embedding"], input_seqs, axis=0).astype(jnp.float32)
    emb_p = jnp.zeros((T, Bp, Hp), jnp.float32).at[:, :B, :H].set(emb)

    # --- gate-aligned, zero-padded weight layout -----------------------------
    w_ih = params["w_ih"].astype(jnp.float32)   # [4H, H], gate order (i,f,g,o)
    w_hh = params["w_hh"].astype(jnp.float32)
    bias = (params["b_ih"] + params["b_hh"]).astype(jnp.float32)   # [4H]

    def pad_gates_t(w):
        # [4H, H] -> transposed [Hp, 4*Hp]; gate k lives at cols k*Hp:k*Hp+H.
        wt = jnp.zeros((Hp, 4 * Hp), jnp.float32)
        wg = w.reshape(4, H, H)
        for k in range(4):
            wt = wt.at[:H, k * Hp:k * Hp + H].set(wg[k].T)
        return wt

    wih_p = pad_gates_t(w_ih)                        # [Hp, 4Hp] f32
    whh_p = pad_gates_t(w_hh).astype(jnp.bfloat16)   # [Hp, 4Hp] bf16 (MXU)

    bias_p = jnp.zeros((4 * Hp,), jnp.float32)
    bias_g = bias.reshape(4, H)
    for k in range(4):
        bias_p = bias_p.at[k * Hp:k * Hp + H].set(bias_g[k])

    # --- hoisted input projection: one big MXU matmul off the serial chain ---
    gates_x = (jnp.einsum("tbh,hg->tbg", emb_p, wih_p,
                          preferred_element_type=jnp.float32)
               + bias_p)                             # [T, Bp, 4Hp] f32

    # --- lengths as a lane-dense mask operand (loaded once per batch tile) ---
    lens = jnp.zeros((Bp,), jnp.int32).at[:B].set(input_lengths.astype(jnp.int32))
    lens_bc = jnp.broadcast_to(lens[:, None], (Bp, Hp))

    kernel = functools.partial(_lstm_fused_kernel, seq_len=T, hidden_pad=Hp)

    outputs_p, h_p, c_p = pl.pallas_call(
        kernel,
        out_shape=(
            jax.ShapeDtypeStruct((T, Bp, Hp), jnp.float32),   # outputs slab
            jax.ShapeDtypeStruct((Bp, Hp), jnp.float32),       # h_n
            jax.ShapeDtypeStruct((Bp, Hp), jnp.float32),       # c_n
        ),
        grid_spec=pltpu.PrefetchScalarGridSpec(
            num_scalar_prefetch=0,
            grid=(nb,),                                        # batch tiles
            in_specs=[
                pl.BlockSpec((Bt, Hp), lambda i: (i, 0)),          # lengths
                pl.BlockSpec((T, Bt, 4 * Hp), lambda i: (0, i, 0)),  # gates_x
                pl.BlockSpec((Hp, 4 * Hp), lambda i: (0, 0)),      # W_hh^T bf16
            ],
            out_specs=[
                pl.BlockSpec((T, Bt, Hp), lambda i: (0, i, 0)),    # outputs
                pl.BlockSpec((Bt, Hp), lambda i: (i, 0)),          # h_n
                pl.BlockSpec((Bt, Hp), lambda i: (i, 0)),          # c_n
            ],
        ),
        compiler_params=pltpu.CompilerParams(
            dimension_semantics=("parallel",),        # batch tiles -> 2 TCs on v7x
            vmem_limit_bytes=32 * 1024 * 1024,        # explicit, <= v7x physical
        ),
    )(lens_bc, gates_x, whh_p)

    # Strip batch / hidden padding.
    outputs = outputs_p[:, :B, :H]
    h_n = h_p[None, :B, :H]
    c_n = c_p[None, :B, :H]
    return outputs, (h_n, c_n)


def _reference_forward(input_seqs, input_lengths, params):
    """Pure-JAX reference (lax.scan) mirroring the kernel numerics:
    f32 input projection, bf16 recurrent matmul with f32 accumulation,
    f32 elementwise.  Matches PyTorch's f32 LSTM up to bf16 MXU rounding."""
    T, B = input_seqs.shape
    H = params["embedding"].shape[1]
    emb = jnp.take(params["embedding"], input_seqs, axis=0).astype(jnp.float32)
    w_ih, w_hh = params["w_ih"], params["w_hh"]
    b = params["b_ih"] + params["b_hh"]
    lens = input_lengths.astype(jnp.int32)

    gx_all = jnp.einsum("tbh,gh->tbg", emb, w_ih,
                        preferred_element_type=jnp.float32) + b
    w_hh_t = w_hh.T.astype(jnp.bfloat16)

    def step(carry, inp):
        h, c = carry
        gx, t = inp
        gates = gx + jnp.dot(h.astype(jnp.bfloat16), w_hh_t,
                             preferred_element_type=jnp.float32)
        i = jax.nn.sigmoid(gates[:, 0 * H:1 * H])
        f = jax.nn.sigmoid(gates[:, 1 * H:2 * H])
        g = jnp.tanh(gates[:, 2 * H:3 * H])
        o = jax.nn.sigmoid(gates[:, 3 * H:4 * H])
        c_new = f * c + i * g
        h_new = o * jnp.tanh(c_new)
        mask = (t < lens)[:, None]
        c = jnp.where(mask, c_new, c)
        h = jnp.where(mask, h_new, h)
        out = jnp.where(mask, h, 0.0)
        return (h, c), out

    init = (jnp.zeros((B, H), jnp.float32), jnp.zeros((B, H), jnp.float32))
    (h_n, c_n), outs = jax.lax.scan(step, init, (gx_all, jnp.arange(T)))
    return outs, (h_n[None], c_n[None])


def _init_params(key, input_size, hidden_size):
    """Deterministic parameter init matching the module's shapes."""
    k_emb, k1, k2, k3, k4 = jax.random.split(key, 5)
    H = hidden_size
    bound = 1.0 / jnp.sqrt(H)
    return {
        "embedding": jax.random.normal(k_emb, (input_size, H), jnp.float32),
        "w_ih": jax.random.uniform(k1, (4 * H, H), jnp.float32, -bound, bound),
        "w_hh": jax.random.uniform(k2, (4 * H, H), jnp.float32, -bound, bound),
        "b_ih": jax.random.uniform(k3, (4 * H,), jnp.float32, -bound, bound),
        "b_hh": jax.random.uniform(k4, (4 * H,), jnp.float32, -bound, bound),
    }


if __name__ == "__main__":
    T, B, H, V = 8, 2, 32, 50   # seq_len, batch, hidden_size, vocab(input_size)

    key = jax.random.PRNGKey(0)
    k_params, k_tok = jax.random.split(key)
    params = _init_params(k_params, V, H)

    input_seqs = jax.random.randint(k_tok, (T, B), 0, V, dtype=jnp.int32)
    input_lengths = jnp.array([8, 5], dtype=jnp.int32)  # sorted descending

    outputs, (h_n, c_n) = encoder_rnn_forward(input_seqs, input_lengths, params)
    outputs, h_n, c_n = jax.block_until_ready((outputs, h_n, c_n))

    ref_out, (ref_h, ref_c) = _reference_forward(input_seqs, input_lengths, params)
    assert outputs.shape == (T, B, H) and h_n.shape == (1, B, H)
    assert jnp.allclose(outputs, ref_out, atol=1e-3, rtol=1e-3)
    assert jnp.allclose(h_n, ref_h, atol=1e-3, rtol=1e-3)
    assert jnp.allclose(c_n, ref_c, atol=1e-3, rtol=1e-3)

    # TODO(synk): training-mode embedding dropout (RNG mask/scale) not implemented.
    print("KERNEL_OK")
</pallas_src>

<mosaic_0001>
module attributes {stable_mosaic.version = 11 : i64} {
  func.func @_lstm_fused_kernel(%arg0: i32, %arg1: memref<8x128xi32, #tpu.memory_space<vmem>>, %arg2: memref<8x8x512xf32, #tpu.memory_space<vmem>>, %arg3: memref<128x512xbf16, #tpu.memory_space<vmem>>, %arg4: memref<8x8x128xf32, #tpu.memory_space<vmem>>, %arg5: memref<8x128xf32, #tpu.memory_space<vmem>>, %arg6: memref<8x128xf32, #tpu.memory_space<vmem>>) attributes {dimension_semantics = [#tpu.dimension_semantics<parallel>], iteration_bounds = array<i64: 1>, scalar_prefetch = 0 : i64, scratch_operands = 0 : i64, tpu.core_type = #tpu.core_type<tc>, window_params = [{transform_indices = @transform_0, window_bounds = array<i64: 8, 128>}, {transform_indices = @transform_1, window_bounds = array<i64: 8, 8, 512>}, {pipeline_mode = #tpu.pipeline_mode<synchronous>, transform_indices = @transform_2, window_bounds = array<i64: 128, 512>}, {transform_indices = @transform_3, window_bounds = array<i64: 8, 8, 128>}, {transform_indices = @transform_4, window_bounds = array<i64: 8, 128>}, {transform_indices = @transform_5, window_bounds = array<i64: 8, 128>}]} {
    %c0 = arith.constant 0 : index
    %c0_0 = arith.constant 0 : index
    %0 = vector.load %arg1[%c0, %c0_0] : memref<8x128xi32, #tpu.memory_space<vmem>>, vector<8x128xi32>
    %c0_1 = arith.constant 0 : index
    %c0_2 = arith.constant 0 : index
    %1 = vector.load %arg3[%c0_1, %c0_2] : memref<128x512xbf16, #tpu.memory_space<vmem>>, vector<128x512xbf16>
    %cst = arith.constant 0.000000e+00 : f32
    %2 = vector.broadcast %cst : f32 to vector<8x128xf32>
    %c0_i32 = arith.constant 0 : i32
    %c8_i32 = arith.constant 8 : i32
    %3 = arith.addi %c0_i32, %c8_i32 : i32
    %c1_i32 = arith.constant 1 : i32
    %4:2 = scf.for %arg7 = %c0_i32 to %3 step %c1_i32 iter_args(%arg8 = %2, %arg9 = %2) -> (vector<8x128xf32>, vector<8x128xf32>)  : i32 {
      %7 = arith.index_cast %arg7 : i32 to index
      %c0_8 = arith.constant 0 : index
      %c0_9 = arith.constant 0 : index
      %8 = vector.load %arg2[%7, %c0_8, %c0_9] : memref<8x8x512xf32, #tpu.memory_space<vmem>>, vector<1x8x512xf32>
      %9 = vector.shape_cast %8 : vector<1x8x512xf32> to vector<8x512xf32>
      %10 = arith.truncf %arg8 : vector<8x128xf32> to vector<8x128xbf16>
      %cst_10 = arith.constant dense<0.000000e+00> : vector<8x512xf32>
      %11 = tpu.matmul %10, %1, %cst_10 {dimension_numbers = #tpu.dot_dimension_numbers<[1], [0], [0], [1], [0, 0, 1, 1], [], []>} : vector<8x128xbf16>, vector<128x512xbf16>, vector<8x512xf32> -> vector<8x512xf32>
      %12 = arith.addf %9, %11 : vector<8x512xf32>
      %13 = vector.extract_strided_slice %12 {offsets = [0, 0], sizes = [8, 128], strides = [1, 1]} : vector<8x512xf32> to vector<8x128xf32>
      %14 = arith.negf %13 : vector<8x128xf32>
      %15 = math.exp %14 : vector<8x128xf32>
      %cst_11 = arith.constant 1.000000e+00 : f32
      %16 = vector.broadcast %cst_11 : f32 to vector<8x128xf32>
      %17 = arith.addf %16, %15 : vector<8x128xf32>
      %18 = arith.divf %16, %17 : vector<8x128xf32>
      %19 = vector.extract_strided_slice %12 {offsets = [0, 128], sizes = [8, 128], strides = [1, 1]} : vector<8x512xf32> to vector<8x128xf32>
      %20 = arith.negf %19 : vector<8x128xf32>
      %21 = math.exp %20 : vector<8x128xf32>
      %cst_12 = arith.constant 1.000000e+00 : f32
      %22 = vector.broadcast %cst_12 : f32 to vector<8x128xf32>
      %23 = arith.addf %22, %21 : vector<8x128xf32>
      %24 = arith.divf %22, %23 : vector<8x128xf32>
      %25 = vector.extract_strided_slice %12 {offsets = [0, 256], sizes = [8, 128], strides = [1, 1]} : vector<8x512xf32> to vector<8x128xf32>
      %26 = math.tanh %25 : vector<8x128xf32>
      %27 = vector.extract_strided_slice %12 {offsets = [0, 384], sizes = [8, 128], strides = [1, 1]} : vector<8x512xf32> to vector<8x128xf32>
      %28 = arith.negf %27 : vector<8x128xf32>
      %29 = math.exp %28 : vector<8x128xf32>
      %cst_13 = arith.constant 1.000000e+00 : f32
      %30 = vector.broadcast %cst_13 : f32 to vector<8x128xf32>
      %31 = arith.addf %30, %29 : vector<8x128xf32>
      %32 = arith.divf %30, %31 : vector<8x128xf32>
      %33 = arith.mulf %24, %arg9 : vector<8x128xf32>
      %34 = arith.mulf %18, %26 : vector<8x128xf32>
      %35 = arith.addf %33, %34 : vector<8x128xf32>
      %36 = math.tanh %35 : vector<8x128xf32>
      %37 = arith.mulf %32, %36 : vector<8x128xf32>
      %38 = vector.broadcast %arg7 : i32 to vector<8x128xi32>
      %39 = arith.cmpi slt, %38, %0 : vector<8x128xi32>
      %40 = arith.select %39, %35, %arg9 : vector<8x128xi1>, vector<8x128xf32>
      %41 = arith.select %39, %37, %arg8 : vector<8x128xi1>, vector<8x128xf32>
      %cst_14 = arith.constant 0.000000e+00 : f32
      %42 = vector.broadcast %cst_14 : f32 to vector<8x128xf32>
      %43 = arith.select %39, %41, %42 : vector<8x128xi1>, vector<8x128xf32>
      %44 = arith.index_cast %arg7 : i32 to index
      %c0_15 = arith.constant 0 : index
      %c0_16 = arith.constant 0 : index
      %45 = vector.load %arg4[%44, %c0_15, %c0_16] : memref<8x8x128xf32, #tpu.memory_space<vmem>>, vector<1x8x128xf32>
      %46 = vector.shape_cast %45 : vector<1x8x128xf32> to vector<8x128xf32>
      %47 = vector.shape_cast %43 : vector<8x128xf32> to vector<1x8x128xf32>
      tpu.vector_store %arg4[%44, %c0_15, %c0_16], %47 {strides = array<i32>} : memref<8x8x128xf32, #tpu.memory_space<vmem>>, vector<1x8x128xf32>,
      scf.yield %41, %40 : vector<8x128xf32>, vector<8x128xf32>
    }
    %c8_i32_3 = arith.constant 8 : i32
    %c0_4 = arith.constant 0 : index
    %c0_5 = arith.constant 0 : index
    %5 = vector.load %arg5[%c0_4, %c0_5] : memref<8x128xf32, #tpu.memory_space<vmem>>, vector<8x128xf32>
    tpu.vector_store %arg5[%c0_4, %c0_5], %4#0 {strides = array<i32>} : memref<8x128xf32, #tpu.memory_space<vmem>>, vector<8x128xf32>,
    %c0_6 = arith.constant 0 : index
    %c0_7 = arith.constant 0 : index
    %6 = vector.load %arg6[%c0_6, %c0_7] : memref<8x128xf32, #tpu.memory_space<vmem>>, vector<8x128xf32>
    tpu.vector_store %arg6[%c0_6, %c0_7], %4#1 {strides = array<i32>} : memref<8x128xf32, #tpu.memory_space<vmem>>, vector<8x128xf32>,
    return
  }
  func.func @transform_0(%arg0: i32) -> (i32, i32) {
    %c0_i32 = arith.constant 0 : i32
    %c0_i32_0 = arith.constant 0 : i32
    return %arg0, %c0_i32 : i32, i32
  }
  func.func @transform_1(%arg0: i32) -> (i32, i32, i32) {
    %c0_i32 = arith.constant 0 : i32
    %c0_i32_0 = arith.constant 0 : i32
    %c0_i32_1 = arith.constant 0 : i32
    return %c0_i32, %arg0, %c0_i32_0 : i32, i32, i32
  }
  func.func @transform_2(%arg0: i32) -> (i32, i32) {
    %c0_i32 = arith.constant 0 : i32
    %c0_i32_0 = arith.constant 0 : i32
    %c0_i32_1 = arith.constant 0 : i32
    return %c0_i32, %c0_i32_0 : i32, i32
  }
  func.func @transform_3(%arg0: i32) -> (i32, i32, i32) {
    %c0_i32 = arith.constant 0 : i32
    %c0_i32_0 = arith.constant 0 : i32
    %c0_i32_1 = arith.constant 0 : i32
    return %c0_i32, %arg0, %c0_i32_0 : i32, i32, i32
  }
  func.func @transform_4(%arg0: i32) -> (i32, i32) {
    %c0_i32 = arith.constant 0 : i32
    %c0_i32_0 = arith.constant 0 : i32
    return %arg0, %c0_i32 : i32, i32
  }
  func.func @transform_5(%arg0: i32) -> (i32, i32) {
    %c0_i32 = arith.constant 0 : i32
    %c0_i32_0 = arith.constant 0 : i32
    return %arg0, %c0_i32 : i32, i32
  }
}

</mosaic_0001>

<bundles_post_ra>
// kernel: tpu_custom_call.1
= control target key start
LH: loop header
LB: loop body
LE: loop exit
PB: predicated region body
PF: predicated region fallthrough
CT: control target
= control target key end

     0   :  { %11 = vsyncpa [#allocation3], 0  ;;  %s987_s0 = inlined_call_operand.hbm [shape: s32[8,128], index: 0, kind: input, shape index: {}]   ;;  %s988_s1 = inlined_call_operand.hbm [shape: f32[8,8,512], index: 1, kind: input, shape index: {}]   ;;  %s989_s2 = inlined_call_operand.hbm [shape: bf16[128,512], index: 2, kind: input, shape index: {}]   ;;  %s990_s3 = inlined_call_operand.hbm [shape: f32[8,8,128], index: 3, kind: output, shape index: {0}]   ;;  %s991_s4 = inlined_call_operand.hbm [shape: f32[8,128], index: 4, kind: output, shape index: {1}]   ;;  %s992_s5 = inlined_call_operand.hbm [shape: f32[8,128], index: 5, kind: output, shape index: {2}]  }
   0x1   :  { %12 = vsyncpa [#allocation6], 0 }
   0x2   :  { %13 = vsyncpa [#allocation4], 0 }
   0x3   :  { %14 = vsyncpa [#allocation10], 0  ;;  %s704_s18 = smov [#allocation5]   ;;  %s540_s22 = scalar_lea.hbm %s988_s1, 4096 }
   0x4   :  { %s30_s19 = sshll.u32 %s704_s18, 4  ;;  %p541_p0 = scmp.ne.s32.totalorder %s988_s1, %s540_s22  ;;  %s31_s19 = int_to_ptr.vmem [resolvable:$true] %s30_s19 }
   0x5   :  { %p544_p1 = scmp.lt.u32.totalorder %s540_s22, %s988_s1 }
   0x7   :  { %p546_p2 = pnand %p544_p1, %p541_p0 }
   0x9   :  { %549 = shalt.err (!%p546_p2)
}
   0xa   :  { %s550_s27 = scalar_lea.vmem %s31_s19, 4096  ;;  %p555_p4 = scmp.lt.s32.totalorder %s31_s19, %s31_s19 }
   0xb   :  { %p551_p3 = scmp.ne.s32.totalorder %s31_s19, %s550_s27  ;;  %p556_p5 = scmp.lt.s32.totalorder %s550_s27, %s550_s27 }
   0xd   :  { %p557_p6 = por %p556_p5, %p555_p4 }
   0xf   :  { %p558_p7 = pnand %p557_p6, %p551_p3 }
  0x11   :  { %561 = shalt.err (!%p558_p7)
}
  0x12   :  { %s705_s28 = smov 512   ;;  %s706_s29 = smov 32  }
  0x13   :  { %36 = dma.hbm_to_vmem [thread:$0]  %s988_s1, 4096, %s31_s19, [#allocation6], %s705_s28, %s705_s28, %s706_s29  }
  0x14   :  { %s707_s7 = smov [#allocation2]   ;;  %s708_s9 = smov [#allocation7]  }
  0x15   :  { %s21_s8 = sshll.u32 %s707_s7, 4  ;;  %s42_s10 = sshll.u32 %s708_s9, 4  ;;  %s22_s8 = int_to_ptr.vmem [resolvable:$true] %s21_s8  ;;  %s43_s10 = int_to_ptr.vmem [resolvable:$true] %s42_s10 }
  0x16   :  { %s562_s13 = scalar_lea.hbm %s987_s0, 128 }
  0x17   :  { %p563_p8 = scmp.ne.s32.totalorder %s987_s0, %s562_s13  ;;  %p566_p9 = scmp.lt.u32.totalorder %s562_s13, %s987_s0 }
  0x19   :  { %p568_p10 = pnand %p566_p9, %p563_p8 }
  0x1b   :  { %571 = shalt.err (!%p568_p10)
}
  0x1c   :  { %s572_s1 = scalar_lea.vmem %s22_s8, 128  ;;  %p577_p12 = scmp.lt.s32.totalorder %s22_s8, %s22_s8 }
  0x1d   :  { %p573_p11 = scmp.ne.s32.totalorder %s22_s8, %s572_s1  ;;  %p578_p13 = scmp.lt.s32.totalorder %s572_s1, %s572_s1 }
  0x1f   :  { %p579_p0 = por %p578_p13, %p577_p12 }
  0x21   :  { %p580_p1 = pnand %p579_p0, %p573_p11 }
  0x23   :  { %583 = shalt.err (!%p580_p1)
}
  0x24   :  { %24 = dma.hbm_to_vmem [thread:$0]  %s987_s0, 128, %s22_s8, [#allocation3]  }
  0x25   :  { %s584_s22 = scalar_lea.hbm %s989_s2, 4096 }
  0x26   :  { %p585_p2 = scmp.ne.s32.totalorder %s989_s2, %s584_s22  ;;  %p588_p3 = scmp.lt.u32.totalorder %s584_s22, %s989_s2 }
  0x28   :  { %p590_p4 = pnand %p588_p3, %p585_p2 }
  0x2a   :  { %593 = shalt.err (!%p590_p4)
}
  0x2b   :  { %s594_s27 = scalar_lea.vmem %s43_s10, 4096  ;;  %p599_p6 = scmp.lt.s32.totalorder %s43_s10, %s43_s10 }
  0x2c   :  { %p595_p5 = scmp.ne.s32.totalorder %s43_s10, %s594_s27  ;;  %p600_p7 = scmp.lt.s32.totalorder %s594_s27, %s594_s27 }
  0x2e   :  { %p601_p8 = por %p600_p7, %p599_p6 }
  0x30   :  { %p602_p9 = pnand %p601_p8, %p595_p5 }
  0x32   :  { %605 = shalt.err (!%p602_p9)
}
  0x33   :  { %s709_s0 = smov 256   ;;  %s710_s28 = smov 16  }
  0x34   :  { %48 = dma.hbm_to_vmem [thread:$0]  %s989_s2, 4096, %s43_s10, [#allocation6], %s709_s0, %s709_s0, %s710_s28  }
  0x35   :  { %684 = dma.done.wait [#allocation3], 128  }
  0x36   :  { %685 = vsyncadd [#allocation3], 4294967168 }
  0x37   :  { %686 = dma.done.wait [#allocation6], 8192  }
  0x38   :  { %687 = vsyncadd [#allocation6], 4294959104  ;;  %v783_v0 = vld [vmem:[#allocation2] sm:$0xff]  ;;  %v785_v1 = vld [vmem:[#allocation7] sm:$0xff]  ;;  %v849_v33 = vmov 0.0   ;;  %v851_v34 = vmov 0.0  }
  0x39   :  { %v787_v2 = vld [vmem:[#allocation7 + $0x8] sm:$0xff]  ;;  %v789_v3 = vld [vmem:[#allocation7 + $0x10] sm:$0xff]  ;;  %v791_v4 = vld [vmem:[#allocation7 + $0x18] sm:$0xff]  ;;  %s853_s2 = smov 0  }
  0x3a   :  { %v793_v5 = vld [vmem:[#allocation7 + $0x20] sm:$0xff]  ;;  %v795_v6 = vld [vmem:[#allocation7 + $0x28] sm:$0xff]  ;;  %v797_v7 = vld [vmem:[#allocation7 + $0x30] sm:$0xff] }
  0x3b   :  { %v799_v8 = vld [vmem:[#allocation7 + $0x38] sm:$0xff]  ;;  %v801_v9 = vld [vmem:[#allocation7 + $0x40] sm:$0xff]  ;;  %v803_v10 = vld [vmem:[#allocation7 + $0x48] sm:$0xff] }
  0x3c   :  { %v805_v11 = vld [vmem:[#allocation7 + $0x50] sm:$0xff]  ;;  %v807_v12 = vld [vmem:[#allocation7 + $0x58] sm:$0xff]  ;;  %v809_v13 = vld [vmem:[#allocation7 + $0x60] sm:$0xff] }
  0x3d   :  { %v811_v14 = vld [vmem:[#allocation7 + $0x68] sm:$0xff]  ;;  %v813_v15 = vld [vmem:[#allocation7 + $0x70] sm:$0xff]  ;;  %v815_v16 = vld [vmem:[#allocation7 + $0x78] sm:$0xff] }
  0x3e   :  { %v817_v17 = vld [vmem:[#allocation7 + $0x80] sm:$0xff]  ;;  %v819_v18 = vld [vmem:[#allocation7 + $0x88] sm:$0xff]  ;;  %v821_v19 = vld [vmem:[#allocation7 + $0x90] sm:$0xff] }
  0x3f   :  { %v823_v20 = vld [vmem:[#allocation7 + $0x98] sm:$0xff]  ;;  %v825_v21 = vld [vmem:[#allocation7 + $0xa0] sm:$0xff]  ;;  %v827_v22 = vld [vmem:[#allocation7 + $0xa8] sm:$0xff] }
  0x40   :  { %v829_v23 = vld [vmem:[#allocation7 + $0xb0] sm:$0xff]  ;;  %v831_v24 = vld [vmem:[#allocation7 + $0xb8] sm:$0xff]  ;;  %v833_v25 = vld [vmem:[#allocation7 + $0xc0] sm:$0xff] }
  0x41   :  { %v835_v26 = vld [vmem:[#allocation7 + $0xc8] sm:$0xff]  ;;  %v837_v27 = vld [vmem:[#allocation7 + $0xd0] sm:$0xff]  ;;  %v839_v28 = vld [vmem:[#allocation7 + $0xd8] sm:$0xff] }
  0x42   :  { %v841_v29 = vld [vmem:[#allocation7 + $0xe0] sm:$0xff]  ;;  %v843_v30 = vld [vmem:[#allocation7 + $0xe8] sm:$0xff]  ;;  %v845_v31 = vld [vmem:[#allocation7 + $0xf0] sm:$0xff] }
  0x43   :  { %v847_v32 = vld [vmem:[#allocation7 + $0xf8] sm:$0xff] }
  0x44 LB: > { %v451_v35 = vcombine.high %v785_v1, %v789_v3  ;;  %v450_v36 = vcombine.low %v785_v1, %v789_v3  ;;  %v455_v37 = vcombine.high %v793_v5, %v797_v7  ;;  %v453_v38 = vcombine.high %v787_v2, %v791_v4  ;;  %s486_s6 = sshll.u32 %s702_s2, 5  ;;  %s485_s8 = sshll.u32 %s702_s2, 3  ;;  %s702_s2 = sphi %s853_s2, %s97_s2   ;;  %v698_v34 = vphi %v851_v34, %v994_v34   ;;  %v694_v33 = vphi %v849_v33, %v993_v33  }
  0x45   : > { %v452_v39 = vcombine.low %v787_v2, %v791_v4  ;;  %v457_v40 = vcombine.high %v795_v6, %v799_v8  ;;  %v454_v41 = vcombine.low %v793_v5, %v797_v7  ;;  %v459_v42 = vcombine.high %v801_v9, %v805_v11  ;;  %s102_s7 = scalar_lea.vmem [#allocation5], %s486_s6  ;;  %s384_s9 = scalar_lea.vmem [#allocation8], %s485_s8 }
  0x46   : > { %268 = vmatprep.subr.bf16.mxu0 %v451_v35  ;;  %309 = vmatprep.subr.bf16.mxu1 %v453_v38  ;;  %v456_v43 = vcombine.low %v795_v6, %v799_v8  ;;  %v461_v44 = vcombine.high %v803_v10, %v807_v12  ;;  %v711_v45 = vmov 0   ;;  %v458_v46 = vcombine.low %v801_v9, %v805_v11 }
  0x47   : > { %269 = vmatpush1.bf16.msra.mxu0 %v450_v36  ;;  %310 = vmatpush1.bf16.msra.mxu1 %v452_v39  ;;  %v463_v47 = vcombine.high %v809_v13, %v813_v15  ;;  %v460_v48 = vcombine.low %v803_v10, %v807_v12  ;;  %v465_v49 = vcombine.high %v811_v14, %v815_v16 }
  0x48   : > { %270 = vmatprep.subr.bf16.mxu0 %v455_v37  ;;  %311 = vmatprep.subr.bf16.mxu1 %v457_v40  ;;  %v462_v50 = vcombine.low %v809_v13, %v813_v15  ;;  %v467_v51 = vcombine.high %v817_v17, %v821_v19  ;;  %v464_v52 = vcombine.low %v811_v14, %v815_v16  ;;  %v103_v40 = vld [vmem:[%s102_s7] sm:$0xff] }
  0x49   : > { %300 = vmatprep.mubr.bf16.mxu0 %v711_v45  ;;  %341 = vmatprep.mubr.bf16.mxu1 %v711_v45  ;;  %v469_v53 = vcombine.high %v819_v18, %v823_v20  ;;  %v466_v54 = vcombine.low %v817_v17, %v821_v19  ;;  %v471_v55 = vcombine.high %v825_v21, %v829_v23 }
  0x4a   : > { %v468_v56 = vcombine.low %v819_v18, %v823_v20  ;;  %v473_v57 = vcombine.high %v827_v22, %v831_v24  ;;  %v470_v58 = vcombine.low %v825_v21, %v829_v23  ;;  %v475_v59 = vcombine.high %v833_v25, %v837_v27 }
  0x4b   : > { %271 = vmatpush1.bf16.msra.mxu0 %v454_v41  ;;  %312 = vmatpush1.bf16.msra.mxu1 %v456_v43  ;;  %v472_v60 = vcombine.low %v827_v22, %v831_v24  ;;  %v477_v61 = vcombine.high %v835_v26, %v839_v28  ;;  %v474_v62 = vcombine.low %v833_v25, %v837_v27  ;;  %v104_v41 = vld [vmem:[%s102_s7 + $0x8] sm:$0xff] }
  0x4c   : > { %272 = vmatprep.subr.bf16.mxu0 %v459_v42  ;;  %313 = vmatprep.subr.bf16.mxu1 %v461_v44  ;;  %v479_v63 = vcombine.high %v841_v29, %v845_v31  ;;  %v476_v35 = vcombine.low %v835_v26, %v839_v28  ;;  %v481_v36 = vcombine.high %v843_v30, %v847_v32 }
  0x4d   : > { %v478_v37 = vcombine.low %v841_v29, %v845_v31  ;;  %v480_v38 = vcombine.low %v843_v30, %v847_v32  ;;  %v107_v39 = vpack.c.bf16 %v698_v34, %v698_v34 }
  0x4f   : > { %273 = vmatpush1.bf16.msra.mxu0 %v458_v46  ;;  %314 = vmatpush1.bf16.msra.mxu1 %v460_v48 }
  0x50   : > { %274 = vmatprep.subr.bf16.mxu0 %v463_v47  ;;  %315 = vmatprep.subr.bf16.mxu1 %v465_v49 }
  0x53   : > { %275 = vmatpush1.bf16.msra.mxu0 %v462_v50  ;;  %316 = vmatpush1.bf16.msra.mxu1 %v464_v52 }
  0x54   : > { %276 = vmatprep.subr.bf16.mxu0 %v467_v51  ;;  %317 = vmatprep.subr.bf16.mxu1 %v469_v53  ;;  %v106_v53 = vld [vmem:[%s102_s7 + $0x18] sm:$0xff] }
  0x57   : > { %277 = vmatpush1.bf16.msra.mxu0 %v466_v54  ;;  %318 = vmatpush1.bf16.msra.mxu1 %v468_v56  ;;  %v105_v56 = vld [vmem:[%s102_s7 + $0x10] sm:$0xff] }
  0x58   : > { %278 = vmatprep.subr.bf16.mxu0 %v471_v55  ;;  %319 = vmatprep.subr.bf16.mxu1 %v473_v57 }
  0x5b   : > { %279 = vmatpush1.bf16.msra.mxu0 %v470_v58  ;;  %320 = vmatpush1.bf16.msra.mxu1 %v472_v60 }
  0x5c   : > { %280 = vmatprep.subr.bf16.mxu0 %v475_v59  ;;  %321 = vmatprep.subr.bf16.mxu1 %v477_v61 }
  0x5f   : > { %281 = vmatpush1.bf16.msra.mxu0 %v474_v62  ;;  %322 = vmatpush1.bf16.msra.mxu1 %v476_v35 }
  0x60   : > { %282 = vmatprep.subr.bf16.mxu0 %v479_v63  ;;  %323 = vmatprep.subr.bf16.mxu1 %v481_v36 }
  0x63   : > { %283 = vmatpush1.bf16.msra.mxu0 %v478_v37  ;;  %324 = vmatpush1.bf16.msra.mxu1 %v480_v38  ;;  %v378_v37 = vstv %s702_s2  ;;  %s97_s2 = sadd.s32 1, %s702_s2  }
  0x64   : > { %vm379_vm0 = vcmp.lt.s32.totalorder %v378_v37, %v783_v0  ;;  %p94_p10 = scmp.ge.s32.totalorder %s97_s2, 8  }
  0x65   :  { %s712_s10 = smov (%p94_p10), [#allocation9]   ;;  %s713_s12 = smov (%p94_p10), [#allocation8]  }
  0x66   : > { %301 = vmatmul.mubr.bf16.vlgmr.msra.gmra.mrb[0].mxu0 %v107_v39  ;;  %342 = vmatmul.mubr.bf16.vlgmr.msra.gmra.mrb[0].mxu1 %v107_v39  ;;  %s406_s11 = sshll.u32 (%p94_p10), %s712_s10, 4  ;;  %s393_s13 = sshll.u32 (%p94_p10), %s713_s12, 4  ;;  %s407_s11 = int_to_ptr.vmem [resolvable:$true] %s406_s11  ;;  %s944_s13 = int_to_ptr.vmem [resolvable:$true] %s393_s13 }
  0x67   :  { %s606_s14 = scalar_lea.vmem (%p94_p10), %s407_s11, 128  ;;  %p611_p12 = scmp.lt.s32.totalorder (%p94_p10), %s407_s11, %s407_s11 }
  0x68   :  { %p607_p11 = scmp.ne.s32.totalorder (%p94_p10), %s407_s11, %s606_s14  ;;  %p612_p13 = scmp.lt.s32.totalorder (%p94_p10), %s606_s14, %s606_s14 }
  0x6a   :  { %p613_p0 = por (%p94_p10), %p612_p13, %p611_p12 }
  0x6c   :  { %p614_p1 = pnand (%p94_p10), %p613_p0, %p607_p11 }
 0x139   : > { %v302_v42 = vpop.f32.mrb[0].mxu0  ;;  %v343_v45 = vpop.f32.mrb[0].mxu1 }
 0x13a   : > { %v350_v43 = vadd.f32 %v302_v42, %v103_v40  ;;  %v304_v44 = vpop.f32.mrb[1].mxu0  ;;  %v345_v48 = vpop.f32.mrb[1].mxu1  ;;  %v352_v58 = vadd.f32 %v343_v45, %v105_v56 }
 0x13b   : > { %v351_v46 = vadd.f32 %v304_v44, %v104_v41  ;;  %v306_v47 = vpop.f32.mrb[2].mxu0  ;;  %v347_v51 = vpop.f32.mrb[2].mxu1  ;;  %v353_v55 = vadd.f32 %v345_v48, %v106_v53 }
 0x13c   : > { %v482_v49 = vmul.f32 -1.442695, %v350_v43  ;;  %v307_v50 = vpop.f32.mrb[3].mxu0  ;;  %v348_v54 = vpop.f32.mrb[3].mxu1 }
 0x13d   : > { %v483_v52 = vmul.f32 -1.442695, %v351_v46  ;;  %v484_v57 = vmul.f32 -1.442695, %v353_v55 }
 0x13e   : > { %524 = vpow2.f32 %v482_v49 }
 0x13f   : > { %526 = vpow2.f32 %v483_v52 }
 0x140   : > { %528 = vpow2.f32 %v484_v57 }
 0x141   : > { %530 = vtanh.f32 %v352_v58 }
 0x148   : > { %v525_v59 = vpop.eup %524 }
 0x149   : > { %v527_v60 = vpop.eup %526  ;;  %v357_v61 = vadd.f32 1.0, %v525_v59 }
 0x14a   : > { %v363_v62 = vadd.f32 1.0, %v527_v60  ;;  %v529_v63 = vpop.eup %528 }
 0x14b   : > { %532 = vrcp.f32 %v357_v61  ;;  %v531_v35 = vpop.eup %530  ;;  %v370_v38 = vadd.f32 1.0, %v529_v63 }
 0x14c   : > { %534 = vrcp.f32 %v363_v62 }
 0x14d   : > { %536 = vrcp.f32 %v370_v38 }
 0x155   : > { %v533_v36 = vpop.eup %532 }
 0x156   : > { %v535_v39 = vpop.eup %534  ;;  %v374_v40 = vmul.f32 %v533_v36, %v531_v35 }
 0x157   : > { %v373_v41 = vmul.f32 %v694_v33, %v535_v39  ;;  %v537_v44 = vpop.eup %536 }
 0x159   : > { %v375_v42 = vadd.f32 %v374_v40, %v373_v41 }
 0x15b   : > { %538 = vtanh.f32 %v375_v42  ;;  %v380_v43 = vsel %vm379_vm0, %v375_v42, %v694_v33  }
 0x15c   : > { %v993_v33 = vmov %v380_v43  ;;  %387 = vst [vmem:[#allocation11] sm:$0xff] (%p94_p10), %v380_v43 }
 0x163   :  { %96 = sbr.rel (!%p94_p10) target bundleno = 68 (0x44), region = 69 }
 0x165   : > { %v539_v45 = vpop.eup %538 }
 0x166   : > { %v377_v46 = vmul.f32 %v539_v45, %v537_v44 }
 0x168   : > { %v381_v47 = vsel %vm379_vm0, %v377_v46, %v698_v34   ;;  %v382_v48 = vsel %vm379_vm0, %v377_v46, 0.0 }
 0x169   : > { %385 = vst [vmem:[%s384_s9] sm:$0xff] %v382_v48  ;;  %v994_v34 = vmov %v381_v47  ;;  %386 = vst [vmem:[#allocation9] sm:$0xff] (%p94_p10), %v381_v47 }
 0x16a   :  { %617 = shalt.err (!%p614_p1)
}
 0x16b   :  { %s618_s17 = scalar_lea.hbm %s991_s4, 128 }
 0x16c   :  { %p619_p2 = scmp.ne.s32.totalorder %s991_s4, %s618_s17  ;;  %p622_p3 = scmp.lt.u32.totalorder %s618_s17, %s991_s4 }
 0x16e   :  { %p624_p4 = pnand %p622_p3, %p619_p2 }
 0x170   :  { %627 = shalt.err (!%p624_p4)
}
 0x171   :  { %409 = dma.vmem_to_hbm [thread:$0]  %s407_s11, 128, %s991_s4, [#allocation10]  }
 0x172   :  { %s628_s23 = scalar_lea.vmem %s944_s13, 1024  ;;  %p633_p6 = scmp.lt.s32.totalorder %s944_s13, %s944_s13 }
 0x173   :  { %p629_p5 = scmp.ne.s32.totalorder %s944_s13, %s628_s23  ;;  %p634_p7 = scmp.lt.s32.totalorder %s628_s23, %s628_s23 }
 0x175   :  { %p635_p8 = por %p634_p7, %p633_p6 }
 0x177   :  { %p636_p9 = pnand %p635_p8, %p629_p5 }
 0x179   :  { %639 = shalt.err (!%p636_p9)
}
 0x17a   :  { %s640_s26 = scalar_lea.hbm %s990_s3, 1024 }
 0x17b   :  { %p641_p10 = scmp.ne.s32.totalorder %s990_s3, %s640_s26  ;;  %p644_p11 = scmp.lt.u32.totalorder %s640_s26, %s990_s3 }
 0x17d   :  { %p646_p12 = pnand %p644_p11, %p641_p10 }
 0x17f   :  { %649 = shalt.err (!%p646_p12)
}
 0x180   :  { %s714_s4 = smov 128   ;;  %s715_s30 = smov 8  }
 0x181   :  { %399 = dma.vmem_to_hbm [thread:$0]  %s944_s13, 1024, %s990_s3, [#allocation4], %s714_s4, %s714_s4, %s715_s30  }
 0x182   :  { %s716_s7 = smov [#allocation11]  }
 0x183   :  { %s416_s8 = sshll.u32 %s716_s7, 4  ;;  %s417_s8 = int_to_ptr.vmem [resolvable:$true] %s416_s8 }
 0x184   :  { %s650_s9 = scalar_lea.vmem %s417_s8, 128  ;;  %p655_p0 = scmp.lt.s32.totalorder %s417_s8, %s417_s8 }
 0x185   :  { %p651_p13 = scmp.ne.s32.totalorder %s417_s8, %s650_s9  ;;  %p656_p1 = scmp.lt.s32.totalorder %s650_s9, %s650_s9 }
 0x187   :  { %p657_p2 = por %p656_p1, %p655_p0 }
 0x189   :  { %p658_p3 = pnand %p657_p2, %p651_p13 }
 0x18b   :  { %661 = shalt.err (!%p658_p3)
}
 0x18c   :  { %s662_s12 = scalar_lea.hbm %s992_s5, 128 }
 0x18d   :  { %p663_p4 = scmp.ne.s32.totalorder %s992_s5, %s662_s12  ;;  %p666_p5 = scmp.lt.u32.totalorder %s662_s12, %s992_s5 }
 0x18f   :  { %p668_p6 = pnand %p666_p5, %p663_p4 }
 0x191   :  { %671 = shalt.err (!%p668_p6)
}
 0x192   :  { %419 = dma.vmem_to_hbm [thread:$0]  %s417_s8, 128, %s992_s5, [#allocation10]  }
 0x193   :  { %688 = dma.done.wait [#allocation4], 1024  }
 0x194   :  { %689 = vsyncadd [#allocation4], 4294966272 }
 0x195   :  { %690 = dma.done.wait [#allocation10], 256  }
 0x196   :  { %691 = vsyncadd [#allocation10], 4294967040 }
 0x197   :  { %429 = vsyncpa [#allocation3], 1 }
 0x198   :  { %430 = vsyncpa [#allocation6], 1 }
 0x199   :  { %431 = vsyncpa [#allocation4], 1 }
 0x19a   :  { %432 = vsyncpa [#allocation10], 1 }

</bundles_post_ra>
